<compile_context>
chip_gen: v7x
topology: tpu7x:2x2x1
jax: 0.10.0
libtpu: 0.0.40
codegen_flags: <defaults>
</compile_context>

<pallas_src>
import jax
import jax.numpy as jnp
from jax.experimental import pallas as pl
from jax.experimental.pallas import tpu as pltpu


def _round_up(x, m):
    return (x + m - 1) // m * m


def _mlp_kernel(x_ref, w1_ref, b1_ref, w2_ref, b2_ref, o_ref):
    # relu(x @ W1 + b1) @ W2 + b2
    # Dots accumulate in f32 on the MXU; bias adds + ReLU stay f32 on the VPU.
    x = x_ref[...].astype(w1_ref.dtype)            # no-op in the f32 path
    h = jnp.dot(x, w1_ref[...], preferred_element_type=jnp.float32) + b1_ref[...]
    h = jnp.maximum(h, 0.0).astype(w2_ref.dtype)   # single small cast in bf16 path
    q = jnp.dot(h, w2_ref[...], preferred_element_type=jnp.float32) + b2_ref[...]
    o_ref[...] = q.astype(o_ref.dtype)


def pack_params(w1, b1, w2, b2, matmul_dtype=jnp.float32):
    """One-time param prep: cast weights to the MXU operand dtype, keep biases f32.

    The f32 originals remain the master copy outside the kernel; no casts run
    inside the kernel's grid loop.
    """
    w1p = w1.astype(matmul_dtype)
    w2p = w2.astype(matmul_dtype)
    b1p = jnp.reshape(b1, (1, -1)).astype(jnp.float32)
    b2p = jnp.reshape(b2, (1, -1)).astype(jnp.float32)
    return w1p, b1p, w2p, b2p


def network_forward(state, w1, b1, w2, b2, *, tile_b=2048, min_grid_steps=2,
                    xla_fallback_max_batch=0):
    """Pallas forward pass: relu(state @ W1 + b1) @ W2 + b2.

    `state` is (batch, input_size); params come from pack_params.
    """
    batch, input_size = state.shape
    hidden = w1.shape[1]
    nb_actions = w2.shape[1]

    if batch <= xla_fallback_max_batch:
        # Tiny-batch (per-step action selection) fast path: let XLA fuse the
        # whole thing into one dispatch instead of paying kernel-launch cost.
        h = jnp.maximum(state.astype(w1.dtype) @ w1 + b1, 0.0)
        return (h.astype(w2.dtype) @ w2 + b2).astype(jnp.float32)

    # Row tile: as large as possible (amortizes ~0.35 us/grid-step overhead),
    # multiple of 8 for sublane alignment.  For large batches split into
    # >= min_grid_steps balanced tiles so the "parallel" batch axis can be
    # sharded across v7x's two TensorCores.
    b8 = _round_up(batch, 8)
    tile_b = _round_up(max(8, min(tile_b, b8)), 8)
    if min_grid_steps > 1 and b8 >= min_grid_steps * 128:
        tile_b = min(tile_b, _round_up(pl.cdiv(b8, min_grid_steps), 8))
    b_pad = _round_up(batch, tile_b)
    grid = (b_pad // tile_b,)

    x = state.astype(jnp.float32)
    if b_pad != batch:
        x = jnp.pad(x, ((0, b_pad - batch), (0, 0)))   # row pad only, no lane pad

    out = pl.pallas_call(
        _mlp_kernel,
        out_shape=jax.ShapeDtypeStruct((b_pad, nb_actions), jnp.float32),
        grid=grid,
        in_specs=[
            pl.BlockSpec((tile_b, input_size), lambda i: (i, 0)),   # state tile
            pl.BlockSpec((input_size, hidden), lambda i: (0, 0)),   # W1 (resident)
            pl.BlockSpec((1, hidden), lambda i: (0, 0)),            # b1 (resident)
            pl.BlockSpec((hidden, nb_actions), lambda i: (0, 0)),   # W2 (resident)
            pl.BlockSpec((1, nb_actions), lambda i: (0, 0)),        # b2 (resident)
        ],
        out_specs=pl.BlockSpec((tile_b, nb_actions), lambda i: (i, 0)),
        compiler_params=pltpu.CompilerParams(
            dimension_semantics=("parallel",)),   # shard batch over v7x's 2 TCs
    )(x, w1, b1, w2, b2)

    return out[:batch] if b_pad != batch else out


def init_params(key, input_size, nb_actions, hidden=30):
    """Deterministic init mimicking torch.nn.Linear (U(-1/sqrt(fan_in), +))."""
    k1, k2, k3, k4 = jax.random.split(key, 4)
    bound1 = 1.0 / jnp.sqrt(jnp.float32(input_size))
    bound2 = 1.0 / jnp.sqrt(jnp.float32(hidden))
    w1 = jax.random.uniform(k1, (input_size, hidden), jnp.float32, -bound1, bound1)
    b1 = jax.random.uniform(k2, (1, hidden), jnp.float32, -bound1, bound1)
    w2 = jax.random.uniform(k3, (hidden, nb_actions), jnp.float32, -bound2, bound2)
    b2 = jax.random.uniform(k4, (1, nb_actions), jnp.float32, -bound2, bound2)
    return w1, b1, w2, b2


if __name__ == "__main__":
    # Self-driving-car agent: input_size=5 (3 signals + orientation, -orientation),
    # nb_actions=3 (straight, left, right).
    input_size, nb_actions = 5, 3

    key = jax.random.PRNGKey(0)
    k_params, k_state, k_state2 = jax.random.split(key, 3)
    w1, b1, w2, b2 = init_params(k_params, input_size, nb_actions)

    def ref_forward(s):
        return jnp.maximum(s @ w1 + b1, 0.0) @ w2 + b2

    # f32 packed params (default path).
    p32 = pack_params(w1, b1, w2, b2)

    # Small single-state-style batch (matches the original module's usage).
    state = jax.random.normal(k_state, (8, input_size), jnp.float32)
    q = network_forward(state, *p32)
    jax.block_until_ready(q)
    assert q.shape == (8, nb_actions)
    assert jnp.allclose(q, ref_forward(state), atol=1e-4, rtol=1e-4)

    # RL-minibatch-sized, non-multiple-of-8 batch: exercises row padding plus
    # the 2-step "parallel" grid (balanced tiles for the v7x megacore split).
    state2 = jax.random.normal(k_state2, (300, input_size), jnp.float32)
    q2 = network_forward(state2, *p32)
    jax.block_until_ready(q2)
    assert q2.shape == (300, nb_actions)
    assert jnp.allclose(q2, ref_forward(state2), atol=1e-4, rtol=1e-4)

    # bf16 MXU-operand path (weights pre-cast once; f32 accumulate / bias / ReLU).
    pbf16 = pack_params(w1, b1, w2, b2, matmul_dtype=jnp.bfloat16)
    q_bf16 = network_forward(state2, *pbf16)
    jax.block_until_ready(q_bf16)
    assert q_bf16.shape == (300, nb_actions)
    assert jnp.allclose(q_bf16, ref_forward(state2), atol=3e-2, rtol=3e-2)

    # Tiny-batch XLA fast path (single fused dispatch, no Pallas launch).
    q_fast = network_forward(state, *p32, xla_fallback_max_batch=64)
    jax.block_until_ready(q_fast)
    assert jnp.allclose(q_fast, ref_forward(state), atol=1e-4, rtol=1e-4)

    print("KERNEL_OK")
</pallas_src>

<mosaic_0001>
module attributes {stable_mosaic.version = 11 : i64} {
  func.func @_mlp_kernel(%arg0: i32, %arg1: memref<8x5xf32, #tpu.memory_space<vmem>>, %arg2: memref<5x30xf32, #tpu.memory_space<vmem>>, %arg3: memref<1x30xf32, #tpu.memory_space<vmem>>, %arg4: memref<30x3xf32, #tpu.memory_space<vmem>>, %arg5: memref<1x3xf32, #tpu.memory_space<vmem>>, %arg6: memref<8x3xf32, #tpu.memory_space<vmem>>) attributes {dimension_semantics = [#tpu.dimension_semantics<parallel>], iteration_bounds = array<i64: 1>, scalar_prefetch = 0 : i64, scratch_operands = 0 : i64, tpu.core_type = #tpu.core_type<tc>, window_params = [{transform_indices = @transform_0, window_bounds = array<i64: 8, 5>}, {pipeline_mode = #tpu.pipeline_mode<synchronous>, transform_indices = @transform_1, window_bounds = array<i64: 5, 30>}, {pipeline_mode = #tpu.pipeline_mode<synchronous>, transform_indices = @transform_2, window_bounds = array<i64: 1, 30>}, {pipeline_mode = #tpu.pipeline_mode<synchronous>, transform_indices = @transform_3, window_bounds = array<i64: 30, 3>}, {pipeline_mode = #tpu.pipeline_mode<synchronous>, transform_indices = @transform_4, window_bounds = array<i64: 1, 3>}, {transform_indices = @transform_5, window_bounds = array<i64: 8, 3>}]} {
    %c0 = arith.constant 0 : index
    %c0_0 = arith.constant 0 : index
    %0 = vector.load %arg1[%c0, %c0_0] : memref<8x5xf32, #tpu.memory_space<vmem>>, vector<8x5xf32>
    %c0_1 = arith.constant 0 : index
    %c0_2 = arith.constant 0 : index
    %1 = vector.load %arg2[%c0_1, %c0_2] : memref<5x30xf32, #tpu.memory_space<vmem>>, vector<5x30xf32>
    %cst = arith.constant dense<0.000000e+00> : vector<8x30xf32>
    %2 = tpu.matmul %0, %1, %cst {dimension_numbers = #tpu.dot_dimension_numbers<[1], [0], [0], [1], [0, 0, 1, 1], [], []>} : vector<8x5xf32>, vector<5x30xf32>, vector<8x30xf32> -> vector<8x30xf32>
    %c0_3 = arith.constant 0 : index
    %c0_4 = arith.constant 0 : index
    %3 = vector.load %arg3[%c0_3, %c0_4] : memref<1x30xf32, #tpu.memory_space<vmem>>, vector<1x30xf32>
    %4 = vector.broadcast %3 : vector<1x30xf32> to vector<8x30xf32>
    %5 = arith.addf %2, %4 : vector<8x30xf32>
    %cst_5 = arith.constant 0.000000e+00 : f32
    %6 = vector.broadcast %cst_5 : f32 to vector<8x30xf32>
    %7 = arith.maximumf %5, %6 : vector<8x30xf32>
    %c0_6 = arith.constant 0 : index
    %c0_7 = arith.constant 0 : index
    %8 = vector.load %arg4[%c0_6, %c0_7] : memref<30x3xf32, #tpu.memory_space<vmem>>, vector<30x3xf32>
    %cst_8 = arith.constant dense<0.000000e+00> : vector<8x3xf32>
    %9 = tpu.matmul %7, %8, %cst_8 {dimension_numbers = #tpu.dot_dimension_numbers<[1], [0], [0], [1], [0, 0, 1, 1], [], []>} : vector<8x30xf32>, vector<30x3xf32>, vector<8x3xf32> -> vector<8x3xf32>
    %c0_9 = arith.constant 0 : index
    %c0_10 = arith.constant 0 : index
    %10 = vector.load %arg5[%c0_9, %c0_10] : memref<1x3xf32, #tpu.memory_space<vmem>>, vector<1x3xf32>
    %11 = vector.broadcast %10 : vector<1x3xf32> to vector<8x3xf32>
    %12 = arith.addf %9, %11 : vector<8x3xf32>
    %c0_11 = arith.constant 0 : index
    %c0_12 = arith.constant 0 : index
    %13 = vector.load %arg6[%c0_11, %c0_12] : memref<8x3xf32, #tpu.memory_space<vmem>>, vector<8x3xf32>
    tpu.vector_store %arg6[%c0_11, %c0_12], %12 {strides = array<i32>} : memref<8x3xf32, #tpu.memory_space<vmem>>, vector<8x3xf32>,
    return
  }
  func.func @transform_0(%arg0: i32) -> (i32, i32) {
    %c0_i32 = arith.constant 0 : i32
    %c0_i32_0 = arith.constant 0 : i32
    return %arg0, %c0_i32 : i32, i32
  }
  func.func @transform_1(%arg0: i32) -> (i32, i32) {
    %c0_i32 = arith.constant 0 : i32
    %c0_i32_0 = arith.constant 0 : i32
    %c0_i32_1 = arith.constant 0 : i32
    return %c0_i32, %c0_i32_0 : i32, i32
  }
  func.func @transform_2(%arg0: i32) -> (i32, i32) {
    %c0_i32 = arith.constant 0 : i32
    %c0_i32_0 = arith.constant 0 : i32
    %c0_i32_1 = arith.constant 0 : i32
    return %c0_i32, %c0_i32_0 : i32, i32
  }
  func.func @transform_3(%arg0: i32) -> (i32, i32) {
    %c0_i32 = arith.constant 0 : i32
    %c0_i32_0 = arith.constant 0 : i32
    %c0_i32_1 = arith.constant 0 : i32
    return %c0_i32, %c0_i32_0 : i32, i32
  }
  func.func @transform_4(%arg0: i32) -> (i32, i32) {
    %c0_i32 = arith.constant 0 : i32
    %c0_i32_0 = arith.constant 0 : i32
    %c0_i32_1 = arith.constant 0 : i32
    return %c0_i32, %c0_i32_0 : i32, i32
  }
  func.func @transform_5(%arg0: i32) -> (i32, i32) {
    %c0_i32 = arith.constant 0 : i32
    %c0_i32_0 = arith.constant 0 : i32
    return %arg0, %c0_i32 : i32, i32
  }
}

</mosaic_0001>

<bundles_post_ra>
// kernel: tpu_custom_call.1
= control target key start
LH: loop header
LB: loop body
LE: loop exit
PB: predicated region body
PF: predicated region fallthrough
CT: control target
= control target key end

     0   :  { %vm33_vm0 = vcmask 1044480   ;;  %vm29_vm1 = vcmask 39936   ;;  %v243_v0 = vmov 0.0   ;;  %vm244_vm2 = vmmov 0   ;;  %s304_s1 = inlined_call_operand.vmem [shape: f32[5,30], index: 1, kind: input, shape index: {}]   ;;  %s305_s0 = inlined_call_operand.vmem [shape: f32[8,5], index: 0, kind: input, shape index: {}]   ;;  %s306_s3 = inlined_call_operand.vmem [shape: f32[30,3], index: 3, kind: input, shape index: {}]   ;;  %s307_s2 = inlined_call_operand.vmem [shape: f32[1,30], index: 2, kind: input, shape index: {}]   ;;  %s308_s4 = inlined_call_operand.vmem [shape: f32[1,3], index: 4, kind: input, shape index: {}]   ;;  %s309_s5 = inlined_call_operand.vmem [shape: f32[8,3], index: 5, kind: output, shape index: {}]  }
   0x1   :  { %216 = vmatprep.subr.mxu0 %v243_v0  ;;  %v21_v1 = vld [vmem:[%s304_s1] sm:$0x1f]  ;;  %218 = vmatprep.mubr.msk.f32.mxu0 %vm244_vm2, %v243_v0  ;;  %v245_v4 = vmov 0.0|0.0   ;;  %v109_v5 = vld [vmem:[%s306_s3 + $0x8] sm:$0xff]  ;;  %v110_v7 = vld [vmem:[%s306_s3 + $0x10] sm:$0xff]  ;;  %vm123_vm3 = vcmask 1045504  }
   0x2   :  { %v20_v2 = vld [vmem:[%s305_s0] sm:$0xff]  ;;  %217 = vmatpush3.msk.msra.mxu0 %vm33_vm0, %v21_v1  ;;  %232 = vmatprep.subr.bf16.mxu1 %v245_v4  ;;  %v111_v8 = vld [vmem:[%s306_s3 + $0x18] sm:$0x3f]  ;;  %vm246_vm4 = vmmov 1   ;;  %vm119_vm6 = vcmask 244736   ;;  %vm197_vm7 = vcmask 23552  }
   0x3   :  { %v108_v3 = vld [vmem:[%s306_s3] sm:$0xff]  ;;  %219 = vmatmul.mubr.msk.f32.vlgmr.msra.gmra.mrb[0].mxu0 %vm29_vm1, %v20_v2  ;;  %229 = vmatprep.mubr.msk.f32.mxu1 %vm244_vm2, %v243_v0  ;;  %v236_v9 = vpack.c.bf16 %v111_v8, %v110_v7  ;;  %vm237_vm5 = vmpackc.low %vm123_vm3, %vm246_vm4 }
   0x4   :  { %v233_v6 = vpack.c.bf16 %v109_v5, %v108_v3  ;;  %v203_v10 = vld [vmem:[%s307_s2] ss:$0 sm:$0xff] }
   0x5   :  { %v206_v15 = vld [vmem:[%s308_s4] ss:$0 sm:$0xff] }
   0x6   :  { %234 = vmatpush3.bf16.msra.mxu1 %v233_v6 }
   0x7   :  { %235 = vmatprep.subr.bf16.mxu1 %v245_v4 }
   0xa   :  { %238 = vmatpush3.bf16.msk.msra.mxu1 %vm237_vm5, %v236_v9 }
  0xd6   :  { %v103_v11 = vpop.f32.mrb[0].mxu0 }
  0xd7   :  { %v104_v12 = vadd.f32 %v203_v10, %v103_v11  ;;  %v220_v13 = vpop.f32.mrb[1].mxu0 }
  0xd9   :  { %v107_v14 = vmax.f32 %v104_v12, 0.0 }
  0xdb   :  { %230 = vmatmul.mubr.msk.f32.vlgmr.msra.gmra.mrb[0].mxu1 %vm119_vm6, %v107_v14 }
 0x1ae   :  { %v193_v16 = vpop.f32.mrb[0].mxu1 }
 0x1af   :  { %v194_v17 = vadd.f32 %v206_v15, %v193_v16  ;;  %v231_v18 = vpop.f32.mrb[1].mxu1 }
 0x1b1   :  { %198 = vst.msk [vmem:[%s309_s5] sm:$0xff] %vm197_vm7, %v194_v17 }

</bundles_post_ra>
